<compile_context>
chip_gen: v7x
topology: tpu7x:2x2x1
jax: 0.10.0
libtpu: 0.0.40
codegen_flags: <defaults>
</compile_context>

<pallas_src>
import functools

import jax
import jax.numpy as jnp
from jax.experimental import pallas as pl
from jax.experimental.pallas import tpu as pltpu


def _round_up(n, m):
    return ((n + m - 1) // m) * m


def _pick_tiles(n, target):
    """Lane-aligned tile (multiple of 128) with an EVEN block count.

    An even block count keeps the single parallel grid axis balanced across
    the two TensorCores of a v7x chip (harmless on single-TC v5e/v6e).
    Returns (tile, padded_extent, n_blocks).
    """
    n128 = _round_up(n, 128)
    n_blocks = max(1, -(-n128 // target))
    if n_blocks % 2:
        n_blocks += 1
    tile = _round_up(-(-n128 // n_blocks), 128)
    return tile, tile * n_blocks, n_blocks


# ----------------------------- kernels -------------------------------------

def _vert_kernel(params_ref, sd_ref, tmpl_ref, out_ref):
    """One lane-flat vertex tile: out = tmpl' + params @ sd'.

    params_ref : VMEM (B_pad, Ls_pad)      weight_dtype shape parameters
    sd_ref     : VMEM (Ls_pad, 3*tm)       weight_dtype folded shape dirs, [x|y|z]
    tmpl_ref   : VMEM (1, 3*tm)            f32 folded template, same grouping
    out_ref    : VMEM (B_pad, 3*tm)        f32
    """
    out_ref[...] = tmpl_ref[...] + jnp.dot(
        params_ref[...], sd_ref[...], preferred_element_type=jnp.float32)


def _tex_kernel(params_ref, pc_ref, mean_ref, out_ref):
    """One lane-flat texel tile: out = clip(mean + params @ pc, 0, 1).

    params_ref : VMEM (B_pad, La_pad)   weight_dtype
    pc_ref     : VMEM (La_pad, tp)      weight_dtype principal components
    mean_ref   : VMEM (1, tp)           f32 albedo mean
    out_ref    : VMEM (B_pad, tp)       f32
    """
    out_ref[...] = jnp.clip(
        mean_ref[...] + jnp.dot(params_ref[...], pc_ref[...],
                                preferred_element_type=jnp.float32),
        0.0, 1.0)


# ----------------------------- forward -------------------------------------

def _flame_forward(shape_params, albedo_params,
                   sd_blocks, tmpl_blocks, pc_blocks, mean_blocks,
                   *, M, H, W, Ls, La, Ls_pad, La_pad,
                   tm, n_mt, tp, n_pt, weight_dtype):
    f32 = jnp.float32
    B = shape_params.shape[0]
    B_pad = _round_up(B, 8)          # full-sublane (unmasked) output stores
    M_pad = n_mt * tm
    P_pad = n_pt * tp
    P = H * W * 3

    sp_p = jnp.zeros((B_pad, Ls_pad), weight_dtype).at[:B, :Ls].set(
        shape_params.astype(weight_dtype))
    ap_p = jnp.zeros((B_pad, La_pad), weight_dtype).at[:B, :La].set(
        albedo_params.astype(weight_dtype))

    cparams = pltpu.CompilerParams(
        dimension_semantics=("parallel",),
        vmem_limit_bytes=40 * 1024 * 1024)   # fits v7x's 64 MiB VMEM per TC

    # ---- vertex kernel: shape blendshapes + (pre-folded) rigid transform ---
    vert_flat = pl.pallas_call(
        _vert_kernel,
        out_shape=jax.ShapeDtypeStruct((B_pad, 3 * M_pad), f32),
        grid_spec=pltpu.PrefetchScalarGridSpec(
            num_scalar_prefetch=0,
            grid=(n_mt,),
            in_specs=[
                pl.BlockSpec((B_pad, Ls_pad), lambda i: (0, 0)),
                pl.BlockSpec((None, Ls_pad, 3 * tm), lambda i: (i, 0, 0)),
                pl.BlockSpec((None, 1, 3 * tm), lambda i: (i, 0, 0)),
            ],
            out_specs=pl.BlockSpec((B_pad, 3 * tm), lambda i: (0, i)),
        ),
        compiler_params=cparams,
    )(sp_p, sd_blocks, tmpl_blocks)

    vert = (vert_flat[:B].reshape(B, n_mt, 3, tm)
                         .transpose(0, 1, 3, 2)
                         .reshape(B, M_pad, 3)[:, :M, :])           # (B, M, 3)

    # ---- texture kernel: albedo PCA blend + clip ----------------------------
    tex_flat = pl.pallas_call(
        _tex_kernel,
        out_shape=jax.ShapeDtypeStruct((B_pad, P_pad), f32),
        grid_spec=pltpu.PrefetchScalarGridSpec(
            num_scalar_prefetch=0,
            grid=(n_pt,),
            in_specs=[
                pl.BlockSpec((B_pad, La_pad), lambda i: (0, 0)),
                pl.BlockSpec((None, La_pad, tp), lambda i: (i, 0, 0)),
                pl.BlockSpec((None, 1, tp), lambda i: (i, 0, 0)),
            ],
            out_specs=pl.BlockSpec((B_pad, tp), lambda i: (0, i)),
        ),
        compiler_params=cparams,
    )(ap_p, pc_blocks, mean_blocks)

    tex = tex_flat[:B, :P].reshape(B, H, W, 3)                      # (B, H, W, 3)
    return vert, tex


class FlameModelPallas:
    """FLAME forward on TPU. One-time weight layout in __init__, Pallas in __call__."""

    def __init__(self, template_v, shape_dirs, albedo_mean, albedo_pc,
                 initial_R=None, initial_T=None, initial_scale=None,
                 *, tile_m=2560, tile_p=32768, weight_dtype=jnp.bfloat16):
        f32 = jnp.float32
        hp = jax.lax.Precision.HIGHEST
        template_v = jnp.asarray(template_v, f32)
        shape_dirs = jnp.asarray(shape_dirs, f32)
        albedo_mean = jnp.asarray(albedo_mean, f32)
        albedo_pc = jnp.asarray(albedo_pc, f32)

        M, _, Ls = shape_dirs.shape
        H, W, _, La = albedo_pc.shape
        P = H * W * 3

        Ls_pad = _round_up(Ls, 16)      # bf16 sublane packing on the K dim
        La_pad = _round_up(La, 16)
        tm, M_pad, n_mt = _pick_tiles(M, tile_m)
        tp, P_pad, n_pt = _pick_tiles(P, tile_p)

        # Fold the rigid transform into the vertex weights:
        #   vert = T + scale*(tmpl + sp@SD)@R.T
        #        = (T + tmpl@(R*scale).T) + sp @ fold(SD, R*scale)
        if initial_R is not None:
            Rs = jnp.asarray(initial_R, f32) * jnp.float32(initial_scale)
            Tv = jnp.asarray(initial_T, f32).reshape(3)
        else:
            Rs = jnp.eye(3, dtype=f32)
            Tv = jnp.zeros((3,), f32)
        tmpl_t = jnp.einsum('mk,jk->mj', template_v.reshape(M, 3), Rs,
                            precision=hp) + Tv                       # (M, 3)
        sd_t = jnp.einsum('mkl,jk->mjl', shape_dirs, Rs, precision=hp)  # (M,3,Ls)

        # Block-major, lane-flat [x|y|z] grouping per vertex tile -> each grid
        # step streams ONE contiguous (Ls_pad, 3*tm) block.
        sd_p = jnp.zeros((M_pad, 3, Ls_pad), f32).at[:M, :, :Ls].set(sd_t)
        self.sd_blocks = (sd_p.reshape(n_mt, tm, 3, Ls_pad)
                              .transpose(0, 3, 2, 1)
                              .reshape(n_mt, Ls_pad, 3 * tm)
                              .astype(weight_dtype))
        tmpl_p = jnp.zeros((M_pad, 3), f32).at[:M].set(tmpl_t)
        self.tmpl_blocks = (tmpl_p.reshape(n_mt, tm, 3)
                                  .transpose(0, 2, 1)
                                  .reshape(n_mt, 1, 3 * tm))

        pc_p = jnp.zeros((P_pad, La_pad), f32).at[:P, :La].set(
            albedo_pc.reshape(P, La))
        self.pc_blocks = (pc_p.reshape(n_pt, tp, La_pad)
                              .transpose(0, 2, 1)
                              .reshape(n_pt, La_pad, tp)
                              .astype(weight_dtype))
        mean_p = jnp.zeros((P_pad,), f32).at[:P].set(albedo_mean.reshape(P))
        self.mean_blocks = mean_p.reshape(n_pt, 1, tp)

        jax.block_until_ready((self.sd_blocks, self.tmpl_blocks,
                               self.pc_blocks, self.mean_blocks))

        self._forward = jax.jit(functools.partial(
            _flame_forward, M=M, H=H, W=W, Ls=Ls, La=La,
            Ls_pad=Ls_pad, La_pad=La_pad, tm=tm, n_mt=n_mt, tp=tp, n_pt=n_pt,
            weight_dtype=weight_dtype))

    def __call__(self, shape_params, albedo_params):
        return self._forward(shape_params, albedo_params,
                             self.sd_blocks, self.tmpl_blocks,
                             self.pc_blocks, self.mean_blocks)


if __name__ == "__main__":
    key = jax.random.PRNGKey(0)
    ks = jax.random.split(key, 8)

    # Small, shape-consistent synthetic buffers (deterministic).
    B, M, Ls = 2, 512, 16          # batch, num vertices, shape params
    H, W, La = 16, 16, 8           # texture size, albedo params

    template_v = jax.random.normal(ks[0], (1, M, 3), jnp.float32) * 0.1
    shape_dirs = jax.random.normal(ks[1], (M, 3, Ls), jnp.float32) * 0.01
    albedo_mean = jax.random.uniform(ks[2], (H, W, 3), jnp.float32)
    albedo_pc = jax.random.normal(ks[3], (H, W, 3, La), jnp.float32) * 0.1
    initial_R = jax.random.normal(ks[4], (3, 3), jnp.float32)
    initial_T = jax.random.normal(ks[5], (3,), jnp.float32) * 0.05
    initial_scale = 1.7

    shape_params = jax.random.normal(ks[6], (B, Ls), jnp.float32)
    albedo_params = jax.random.normal(ks[7], (B, La), jnp.float32)

    model = FlameModelPallas(template_v, shape_dirs, albedo_mean, albedo_pc,
                             initial_R, initial_T, initial_scale)
    vert, tex = model(shape_params, albedo_params)
    jax.block_until_ready((vert, tex))

    hp = jax.lax.Precision.HIGHEST

    # Pure-f32 reference (mirrors the PyTorch forward exactly) — loose band,
    # since the kernel intentionally streams the weight tensors in bf16.
    vert_ref = template_v + jnp.einsum('bl,mkl->bmk', shape_params, shape_dirs,
                                       precision=hp)
    vert_ref = initial_T[None, None, :] + jnp.matmul(
        vert_ref * initial_scale, initial_R.T, precision=hp)
    tex_ref = jnp.clip(
        albedo_mean[None] + jnp.einsum('bl,mnkl->bmnk', albedo_params, albedo_pc,
                                       precision=hp),
        0.0, 1.0)

    # Reference with the kernel's bf16 quantization of the FOLDED weights —
    # tight check of the kernel math itself.
    q = lambda x: x.astype(jnp.bfloat16).astype(jnp.float32)
    Rs = initial_R * initial_scale
    tmpl_t = jnp.einsum('mk,jk->mj', template_v[0], Rs, precision=hp) + initial_T
    sd_t = jnp.einsum('mkl,jk->mjl', shape_dirs, Rs, precision=hp)
    vert_q = tmpl_t[None] + jnp.einsum('bl,mjl->bmj', q(shape_params), q(sd_t),
                                       precision=hp)
    tex_q = jnp.clip(
        albedo_mean[None] + jnp.einsum('bl,mnkl->bmnk', q(albedo_params),
                                       q(albedo_pc), precision=hp),
        0.0, 1.0)

    assert vert.shape == (B, M, 3) and tex.shape == (B, H, W, 3)
    assert jnp.allclose(vert, vert_q, atol=2e-3, rtol=2e-3), \
        float(jnp.abs(vert - vert_q).max())
    assert jnp.allclose(tex, tex_q, atol=2e-3, rtol=2e-3), \
        float(jnp.abs(tex - tex_q).max())
    assert jnp.allclose(vert, vert_ref, atol=5e-2, rtol=5e-2), \
        float(jnp.abs(vert - vert_ref).max())
    assert jnp.allclose(tex, tex_ref, atol=5e-2, rtol=5e-2), \
        float(jnp.abs(tex - tex_ref).max())

    print("KERNEL_OK")
</pallas_src>

<mosaic_0001>
module attributes {stable_mosaic.version = 11 : i64} {
  func.func @_tex_kernel(%arg0: i32, %arg1: memref<8x16xbf16, #tpu.memory_space<vmem>>, %arg2: memref<1x16x384xbf16, #tpu.memory_space<vmem>>, %arg3: memref<1x1x384xf32, #tpu.memory_space<vmem>>, %arg4: memref<8x384xf32, #tpu.memory_space<vmem>>) attributes {dimension_semantics = [#tpu.dimension_semantics<parallel>], iteration_bounds = array<i64: 2>, scalar_prefetch = 0 : i64, scratch_operands = 0 : i64, tpu.core_type = #tpu.core_type<tc>, window_params = [{pipeline_mode = #tpu.pipeline_mode<synchronous>, transform_indices = @transform_0, window_bounds = array<i64: 8, 16>}, {transform_indices = @transform_1, window_bounds = array<i64: 1, 16, 384>}, {transform_indices = @transform_2, window_bounds = array<i64: 1, 1, 384>}, {transform_indices = @transform_3, window_bounds = array<i64: 8, 384>}]} {
    %c0 = arith.constant 0 : index
    %c0_0 = arith.constant 0 : index
    %c0_1 = arith.constant 0 : index
    %0 = vector.load %arg3[%c0, %c0_0, %c0_1] : memref<1x1x384xf32, #tpu.memory_space<vmem>>, vector<1x1x384xf32>
    %1 = vector.shape_cast %0 : vector<1x1x384xf32> to vector<1x384xf32>
    %c0_2 = arith.constant 0 : index
    %c0_3 = arith.constant 0 : index
    %2 = vector.load %arg1[%c0_2, %c0_3] : memref<8x16xbf16, #tpu.memory_space<vmem>>, vector<8x16xbf16>
    %c0_4 = arith.constant 0 : index
    %c0_5 = arith.constant 0 : index
    %c0_6 = arith.constant 0 : index
    %3 = vector.load %arg2[%c0_4, %c0_5, %c0_6] : memref<1x16x384xbf16, #tpu.memory_space<vmem>>, vector<1x16x384xbf16>
    %4 = vector.shape_cast %3 : vector<1x16x384xbf16> to vector<16x384xbf16>
    %cst = arith.constant dense<0.000000e+00> : vector<8x384xf32>
    %5 = tpu.matmul %2, %4, %cst {dimension_numbers = #tpu.dot_dimension_numbers<[1], [0], [0], [1], [0, 0, 1, 1], [], []>} : vector<8x16xbf16>, vector<16x384xbf16>, vector<8x384xf32> -> vector<8x384xf32>
    %6 = vector.broadcast %1 : vector<1x384xf32> to vector<8x384xf32>
    %7 = arith.addf %6, %5 : vector<8x384xf32>
    %cst_7 = arith.constant 0.000000e+00 : f32
    %cst_8 = arith.constant 1.000000e+00 : f32
    %8 = vector.broadcast %cst_7 : f32 to vector<8x384xf32>
    %9 = arith.maximumf %8, %7 : vector<8x384xf32>
    %10 = vector.broadcast %cst_8 : f32 to vector<8x384xf32>
    %11 = arith.minimumf %10, %9 : vector<8x384xf32>
    %c0_9 = arith.constant 0 : index
    %c0_10 = arith.constant 0 : index
    %12 = vector.load %arg4[%c0_9, %c0_10] : memref<8x384xf32, #tpu.memory_space<vmem>>, vector<8x384xf32>
    tpu.vector_store %arg4[%c0_9, %c0_10], %11 {strides = array<i32>} : memref<8x384xf32, #tpu.memory_space<vmem>>, vector<8x384xf32>,
    return
  }
  func.func @transform_0(%arg0: i32) -> (i32, i32) {
    %c0_i32 = arith.constant 0 : i32
    %c0_i32_0 = arith.constant 0 : i32
    %c0_i32_1 = arith.constant 0 : i32
    return %c0_i32, %c0_i32_0 : i32, i32
  }
  func.func @transform_1(%arg0: i32) -> (i32, i32, i32) {
    %c0_i32 = arith.constant 0 : i32
    %c0_i32_0 = arith.constant 0 : i32
    %c0_i32_1 = arith.constant 0 : i32
    return %arg0, %c0_i32, %c0_i32_0 : i32, i32, i32
  }
  func.func @transform_2(%arg0: i32) -> (i32, i32, i32) {
    %c0_i32 = arith.constant 0 : i32
    %c0_i32_0 = arith.constant 0 : i32
    %c0_i32_1 = arith.constant 0 : i32
    return %arg0, %c0_i32, %c0_i32_0 : i32, i32, i32
  }
  func.func @transform_3(%arg0: i32) -> (i32, i32) {
    %c0_i32 = arith.constant 0 : i32
    %c0_i32_0 = arith.constant 0 : i32
    return %c0_i32, %arg0 : i32, i32
  }
}

module attributes {stable_mosaic.version = 11 : i64} {
  func.func @_vert_kernel(%arg0: i32, %arg1: memref<8x16xbf16, #tpu.memory_space<vmem>>, %arg2: memref<1x16x768xbf16, #tpu.memory_space<vmem>>, %arg3: memref<1x1x768xf32, #tpu.memory_space<vmem>>, %arg4: memref<8x768xf32, #tpu.memory_space<vmem>>) attributes {dimension_semantics = [#tpu.dimension_semantics<parallel>], iteration_bounds = array<i64: 2>, scalar_prefetch = 0 : i64, scratch_operands = 0 : i64, tpu.core_type = #tpu.core_type<tc>, window_params = [{pipeline_mode = #tpu.pipeline_mode<synchronous>, transform_indices = @transform_0, window_bounds = array<i64: 8, 16>}, {transform_indices = @transform_1, window_bounds = array<i64: 1, 16, 768>}, {transform_indices = @transform_2, window_bounds = array<i64: 1, 1, 768>}, {transform_indices = @transform_3, window_bounds = array<i64: 8, 768>}]} {
    %c0 = arith.constant 0 : index
    %c0_0 = arith.constant 0 : index
    %c0_1 = arith.constant 0 : index
    %0 = vector.load %arg3[%c0, %c0_0, %c0_1] : memref<1x1x768xf32, #tpu.memory_space<vmem>>, vector<1x1x768xf32>
    %1 = vector.shape_cast %0 : vector<1x1x768xf32> to vector<1x768xf32>
    %c0_2 = arith.constant 0 : index
    %c0_3 = arith.constant 0 : index
    %2 = vector.load %arg1[%c0_2, %c0_3] : memref<8x16xbf16, #tpu.memory_space<vmem>>, vector<8x16xbf16>
    %c0_4 = arith.constant 0 : index
    %c0_5 = arith.constant 0 : index
    %c0_6 = arith.constant 0 : index
    %3 = vector.load %arg2[%c0_4, %c0_5, %c0_6] : memref<1x16x768xbf16, #tpu.memory_space<vmem>>, vector<1x16x768xbf16>
    %4 = vector.shape_cast %3 : vector<1x16x768xbf16> to vector<16x768xbf16>
    %cst = arith.constant dense<0.000000e+00> : vector<8x768xf32>
    %5 = tpu.matmul %2, %4, %cst {dimension_numbers = #tpu.dot_dimension_numbers<[1], [0], [0], [1], [0, 0, 1, 1], [], []>} : vector<8x16xbf16>, vector<16x768xbf16>, vector<8x768xf32> -> vector<8x768xf32>
    %6 = vector.broadcast %1 : vector<1x768xf32> to vector<8x768xf32>
    %7 = arith.addf %6, %5 : vector<8x768xf32>
    %c0_7 = arith.constant 0 : index
    %c0_8 = arith.constant 0 : index
    %8 = vector.load %arg4[%c0_7, %c0_8] : memref<8x768xf32, #tpu.memory_space<vmem>>, vector<8x768xf32>
    tpu.vector_store %arg4[%c0_7, %c0_8], %7 {strides = array<i32>} : memref<8x768xf32, #tpu.memory_space<vmem>>, vector<8x768xf32>,
    return
  }
  func.func @transform_0(%arg0: i32) -> (i32, i32) {
    %c0_i32 = arith.constant 0 : i32
    %c0_i32_0 = arith.constant 0 : i32
    %c0_i32_1 = arith.constant 0 : i32
    return %c0_i32, %c0_i32_0 : i32, i32
  }
  func.func @transform_1(%arg0: i32) -> (i32, i32, i32) {
    %c0_i32 = arith.constant 0 : i32
    %c0_i32_0 = arith.constant 0 : i32
    %c0_i32_1 = arith.constant 0 : i32
    return %arg0, %c0_i32, %c0_i32_0 : i32, i32, i32
  }
  func.func @transform_2(%arg0: i32) -> (i32, i32, i32) {
    %c0_i32 = arith.constant 0 : i32
    %c0_i32_0 = arith.constant 0 : i32
    %c0_i32_1 = arith.constant 0 : i32
    return %arg0, %c0_i32, %c0_i32_0 : i32, i32, i32
  }
  func.func @transform_3(%arg0: i32) -> (i32, i32) {
    %c0_i32 = arith.constant 0 : i32
    %c0_i32_0 = arith.constant 0 : i32
    return %c0_i32, %arg0 : i32, i32
  }
}

</mosaic_0001>

<bundles_post_ra>
// kernel: _flame_forward.2
= control target key start
LH: loop header
LB: loop body
LE: loop exit
PB: predicated region body
PF: predicated region fallthrough
CT: control target
= control target key end

     0   :  { %s533_s12 = smov 0   ;;  %s561_s0 = inlined_call_operand.vmem [shape: bf16[8,16], index: 0, kind: input, shape index: {}]   ;;  %s562_s1 = inlined_call_operand.vmem [shape: bf16[2,16,768], index: 1, kind: input, shape index: {}]   ;;  %s563_s2 = inlined_call_operand.vmem [shape: f32[2,1,768], index: 2, kind: input, shape index: {}]   ;;  %s564_s3 = inlined_call_operand.vmem [shape: f32[8,1536], index: 3, kind: output, shape index: {}]  }
   0x1 LB: > { %s539_s13 = sadd.s32 4294967295, %s510_s12   ;;  %p470_p0 = scmp.ge.s32.totalorder %s510_s12, 1  ;;  %s510_s12 = sphi %s533_s12, %s13_s12  }
   0x2   : > { %p146_p1 = scmp.lt.s32.totalorder %s510_s12, 3 }
   0x4   : > { %p147_p2 = pnand %p470_p0, %p146_p1 }
   0x5   : > { %p174_p3 = scmp.lt.s32.totalorder (!%p147_p2), %s539_s13, 1  ;;  %v512_v0 = vmov (!%p147_p2), 0   ;;  %v191_v3 = vld [vmem:[%s561_s0] sm:$0xf] (!%p147_p2)  ;;  %vm228_vm0 = vcmask (!%p147_p2), 130048   ;;  %s183_s21 = smul.u32 (!%p147_p2), 6, %s539_s13  ;;  %v356_v8 = vlaneseq (!%p147_p2) }
   0x6   : > { %150 = sbr.rel (%p147_p2) target bundleno = 247 (0xf7), region = 32  ;;  %264 = vmatprep.mubr.bf16.mxu0 (!%p147_p2), %v512_v0  ;;  %305 = vmatprep.mubr.bf16.mxu1 (!%p147_p2), %v512_v0 }
   0x7   : > { %p184_p4 = scmp.lt.s32.totalorder (!%p147_p2), %s183_s21, 11  ;;  %v357_v9 = vshrl.u32 (!%p147_p2), %v356_v8, 7 }
   0x9   : > { %v358_v10 = vsub.s32 (!%p147_p2), 0, %v357_v9  ;;  %v362_v12 = vsub.s32 (!%p147_p2), 1, %v357_v9  ;;  %v366_v13 = vsub.s32 (!%p147_p2), 2, %v357_v9  ;;  %v370_v15 = vsub.s32 (!%p147_p2), 3, %v357_v9 }
   0xa   : > { %v374_v22 = vsub.s32 (!%p147_p2), 4, %v357_v9  ;;  %v378_v25 = vsub.s32 (!%p147_p2), 5, %v357_v9 }
   0xd   : > { %s175_s14 = scalar_select %p174_p3, %s539_s13, 1 }
   0xe   : > { %s566_s21 = smov (!%p184_p4, %s183_s21), 11 }
   0xf   : > { %s484_s15 = smul.u32 48, %s175_s14  ;;  %s472_s26 = sshll.u32 %s566_s21, 3 }
  0x10   : > { %s485_s22 = smul.u32 6, %s175_s14  ;;  %s187_s29 = scalar_lea.vmem %s564_s3, %s472_s26 }
  0x11   : > { %s178_s18 = scalar_lea.vmem %s562_s1, %s484_s15 }
  0x12   : > { %v495_v1 = vld [vmem:[%s178_s18 + $0x4] ss:$24 sps:$4 sm:$0xff]   ;;  %v497_v2 = vld [vmem:[%s178_s18] ss:$24 sps:$4 sm:$0xff]   ;;  %v498_v4 = vld [vmem:[%s178_s18 + $0x10] ss:$24 sps:$4 sm:$0xff]   ;;  %s182_s25 = scalar_lea.vmem %s563_s2, %s485_s22 }
  0x13   : > { %232 = vmatprep.subr.bf16.mxu0 %v495_v1  ;;  %v500_v5 = vld [vmem:[%s178_s18 + $0x14] ss:$24 sps:$4 sm:$0xff]   ;;  %v503_v7 = vld [vmem:[%s178_s18 + $0x8] ss:$24 sps:$4 sm:$0xff]  }
  0x14   : > { %233 = vmatpush1.bf16.msra.mxu0 %v497_v2  ;;  %v501_v6 = vld [vmem:[%s178_s18 + $0xc] ss:$24 sps:$4 sm:$0xff]  }
  0x15   : > { %314 = vmatprep.subr.bf16.mxu0 %v500_v5  ;;  %273 = vmatprep.subr.bf16.mxu1 %v501_v6  ;;  %v190_v11 = vld [vmem:[%s182_s25] sm:$0x3f] }
  0x16   : > { %274 = vmatpush1.bf16.msra.mxu1 %v503_v7  ;;  %v359_v14 = vrot.slane %v190_v11, %v358_v10  ;;  %v363_v16 = vrot.slane %v190_v11, %v362_v12  ;;  %v367_v18 = vrot.slane %v190_v11, %v366_v13  ;;  %v371_v21 = vrot.slane %v190_v11, %v370_v15 }
  0x17   : > { %479 = vmatmul.mubr.msk.bf16.vlgmr.msra.gmra.mrb[0].mxu0 %vm228_vm0, %v191_v3  ;;  %v375_v32 = vrot.slane %v190_v11, %v374_v22  ;;  %v379_v34 = vrot.slane %v190_v11, %v378_v25 }
  0x18   : > { %315 = vmatpush1.bf16.msra.mxu0 %v498_v4  ;;  %346 = vmatprep.mubr.bf16.mxu0 %v512_v0 }
  0x19   : > { %480 = vmatmul.mubr.msk.bf16.vlgmr.msra.gmra.mrb[0].mxu1 %vm228_vm0, %v191_v3 }
  0x1f   : > { %481 = vmatmul.mubr.msk.bf16.vlgmr.msra.gmra.mrb[4].mxu0 %vm228_vm0, %v191_v3 }
  0xea   : > { %v266_v17 = vpop.f32.mrb[0].mxu0 }
  0xeb   : > { %v386_v19 = vadd.f32 %v359_v14, %v266_v17  ;;  %v268_v20 = vpop.f32.mrb[1].mxu0 }
  0xec   : > { %v387_v23 = vadd.f32 %v363_v16, %v268_v20  ;;  %v270_v24 = vpop.f32.mrb[2].mxu0  ;;  %v307_v27 = vpop.f32.mrb[0].mxu1 }
  0xed   : > { %392 = vst [vmem:[%s187_s29] sm:$0xff] %v386_v19  ;;  %v271_v26 = vpop.f32.mrb[3].mxu0  ;;  %v388_v28 = vadd.f32 %v367_v18, %v307_v27  ;;  %v309_v29 = vpop.f32.mrb[1].mxu1 }
  0xee   : > { %393 = vst [vmem:[%s187_s29 + $0x8] sm:$0xff] %v387_v23  ;;  %v389_v30 = vadd.f32 %v371_v21, %v309_v29  ;;  %v311_v31 = vpop.f32.mrb[2].mxu1 }
  0xef   : > { %394 = vst [vmem:[%s187_s29 + $0x10] sm:$0xff] %v388_v28  ;;  %v312_v33 = vpop.f32.mrb[3].mxu1 }
  0xf0   : > { %395 = vst [vmem:[%s187_s29 + $0x18] sm:$0xff] %v389_v30 }
  0xf2   : > { %v348_v35 = vpop.f32.mrb[4].mxu0 }
  0xf3   : > { %v390_v36 = vadd.f32 %v375_v32, %v348_v35  ;;  %v350_v37 = vpop.f32.mrb[5].mxu0 }
  0xf4   : > { %v391_v38 = vadd.f32 %v379_v34, %v350_v37  ;;  %v352_v39 = vpop.f32.mrb[6].mxu0 }
  0xf5   : > { %396 = vst [vmem:[%s187_s29 + $0x20] sm:$0xff] %v390_v36  ;;  %v353_v40 = vpop.f32.mrb[7].mxu0 }
  0xf6   : > { %397 = vst [vmem:[%s187_s29 + $0x28] sm:$0xff] %v391_v38 }
  0xf7 PF: > { %s13_s12 = sadd.s32 1, %s510_s12  }
  0xf8   : > { %p10_p5 = scmp.ge.s32.totalorder %s13_s12, 4  }
  0xfa   :  { %12 = sbr.rel (!%p10_p5) target bundleno = 1 (0x1), region = 65 }

// kernel: _flame_forward.3
= control target key start
LH: loop header
LB: loop body
LE: loop exit
PB: predicated region body
PF: predicated region fallthrough
CT: control target
= control target key end

     0   :  { %8 = vsyncpa [#allocation3], 0  ;;  %s705_s0 = inlined_call_operand.vmem [shape: bf16[8,16], index: 0, kind: input, shape index: {}]   ;;  %s706_s1 = inlined_call_operand.hbm [shape: bf16[2,16,384], index: 1, kind: input, shape index: {}]   ;;  %s707_s2 = inlined_call_operand.vmem [shape: f32[2,1,384], index: 2, kind: input, shape index: {}]   ;;  %s708_s3 = inlined_call_operand.vmem [shape: f32[8,768], index: 3, kind: output, shape index: {}]  }
   0x1   :  { %10 = vsyncpa [#allocation3 + $0x1], 0  ;;  %s590_s12 = smov 0   ;;  %s592_s13 = smov 0  }
   0x2   :  { %s594_s14 = smov 0   ;;  %s596_s15 = smov 0  }
   0x3 LB: > { %s609_s16 = sadd.s32 4294967295, %s562_s15   ;;  %s612_s17 = sadd.s32 1, %s562_s15   ;;  %s562_s15 = sphi %s596_s15, %s715_s15   ;;  %s558_s14 = sphi %s594_s14, %s714_s14   ;;  %s554_s13 = sphi %s592_s13, %s713_s13   ;;  %s550_s12 = sphi %s590_s12, %s712_s12  }
   0x4   : > { %s41_s18 = ssub.s32 %s562_s15, %s612_s17  ;;  %s44_s19 = sadd.s32 1, %s558_s14 }
   0x5   : > { %p42_p0 = scmp.eq.s32.totalorder %s41_s18, 0  ;;  %p51_p1 = scmp.ne.s32.totalorder %s558_s14, %s554_s13 }
   0x6   : > { %p52_p2 = scmp.eq.s32.totalorder %s562_s15, 0  ;;  %p57_p3 = scmp.ne.s32.totalorder %s554_s13, %s550_s12 }
   0x7   : > { %s622_s20 = scalar_select %p42_p0, %s558_s14, %s44_s19  }
   0x8   : > { %p53_p4 = por %p52_p2, %p51_p1  ;;  %p58_p5 = scmp.eq.s32.totalorder %s609_s16, 0 }
   0x9   : > { %p456_p6 = scmp.lt.s32.totalorder %s562_s15, 2  ;;  %s136_s22 = sand.u32 1, %s558_s14  }
   0xa   : > { %p626_p7 = por %p58_p5, %p57_p3  ;;  %s446_s23 = smul.u32 24, %s136_s22 }
   0xb   : > { %s447_s24 = smul.u32 384, %s562_s15  ;;  %p632_p8 = pnand %p456_p6, %p53_p4 }
   0xc   : > { %s140_s29 = scalar_lea.vmem [#allocation2], %s446_s23  ;;  %s644_s4 = scalar_lea.sflag [#allocation3], %s136_s22 }
   0xd   : > { %s639_s28 = scalar_lea.hbm %s706_s1, %s447_s24  ;;  %s147_s30 = sshll.u32 %s140_s29, 4  ;;  %s641_s30 = int_to_ptr.vmem [resolvable:$true] %s147_s30 }
   0xe   : > { %s498_s5 = scalar_lea.hbm %s639_s28, 384  ;;  %p500_p11 = pneg %p632_p8 }
   0xf   : > { %p499_p10 = scmp.ne.s32.totalorder %s639_s28, %s498_s5  ;;  %s503_s8 = scalar_lea.hbm %s706_s1, 768 }
  0x10   : > { %p504_p0 = scmp.lt.u32.totalorder %s639_s28, %s706_s1  ;;  %p505_p1 = scmp.lt.u32.totalorder %s503_s8, %s498_s5 }
  0x11   : > { %p501_p12 = pnand %p500_p11, %p499_p10  ;;  %p507_p3 = scmp.lt.u32.totalorder %s498_s5, %s639_s28 }
  0x12   : > { %p506_p2 = por %p505_p1, %p504_p0 }
  0x13   : > { %p502_p13 = pneg %p501_p12 }
  0x14   : > { %p508_p4 = por %p507_p3, %p506_p2 }
  0x16   : > { %p509_p5 = pnand %p508_p4, %p502_p13 }
  0x18   : > { %512 = shalt.err (!%p509_p5)
}
  0x19   : > { %s513_s11 = scalar_lea.vmem %s641_s30, 384  ;;  %s564_s12 = smov [#allocation2]  }
  0x1a   : > { %p514_p6 = scmp.ne.s32.totalorder %s641_s30, %s513_s11  ;;  %s518_s18 = sshll.u32 %s564_s12, 4  ;;  %s519_s18 = int_to_ptr.vmem [resolvable:$false] %s518_s18 }
  0x1b   : > { %s520_s19 = scalar_lea.vmem %s519_s18, 768  ;;  %p521_p9 = scmp.lt.s32.totalorder %s641_s30, %s519_s18 }
  0x1c   : > { %p516_p10 = pnand %p514_p6, %p500_p11  ;;  %p522_p0 = scmp.lt.s32.totalorder %s520_s19, %s513_s11 }
  0x1e   : > { %p517_p12 = pneg %p516_p10  ;;  %p523_p1 = por %p522_p0, %p521_p9 }
  0x20   : > { %p524_p2 = pnand %p523_p1, %p517_p12 }
  0x22   : > { %527 = shalt.err (!%p524_p2)
}
  0x23   : > { %s565_s22 = smov 192   ;;  %s566_s23 = smov 12  }
  0x24   : > { %455 = dma.hbm_to_vmem [thread:$0]  (!%p632_p8), %s639_s28, 384, %s641_s30, %s644_s4, %s565_s22, %s565_s22, %s566_s23  }
  0x25   : > { %p162_p11 = scmp.lt.s32.totalorder %s562_s15, 3  ;;  %p711_p13 = scmp.ge.s32.totalorder %s562_s15, 1 }
  0x27   : > { %p163_p3 = pnand %p711_p13, %p162_p11 }
  0x28   : > { %s168_s24 = sand.u32 (!%p163_p3), 1, %s554_s13  }
  0x29   : > { %166 = sbr.rel (%p163_p3) target bundleno = 275 (0x113), region = 32  ;;  %s169_s27 = scalar_lea.sflag (!%p163_p3), [#allocation3], %s168_s24 }
  0x2a   : > { %s448_s26 = smul.u32 (!%p163_p3), 24, %s168_s24 }
  0x2c   : > { %s172_s29 = scalar_lea.vmem (!%p163_p3), [#allocation2], %s448_s26 }
  0x30   : > { %545 = dma.done.wait (%p626_p7), %s169_s27, 384  }
  0x31   : > { %547 = vsyncadd (%p626_p7), %s169_s27, 4294966912  ;;  %v567_v0 = vmov 0.0   ;;  %vm568_vm0 = vmmov 0   ;;  %v569_v1 = vmov 0   ;;  %v494_v2 = vld [vmem:[%s172_s29 + $0x4] ss:$12 sps:$4 sm:$0xff]   ;;  %v318_v6 = vlaneseq }
  0x32   : > { %440 = vmatprep.subr.bf16.mxu1 %v567_v0  ;;  %442 = vmatprep.mubr.msk.bf16.mxu1 %vm568_vm0, %v567_v0  ;;  %v496_v3 = vld [vmem:[%s172_s29 + $0x8] ss:$12 sps:$4 sm:$0xff]   ;;  %v497_v4 = vld [vmem:[%s172_s29] ss:$12 sps:$4 sm:$0xff]   ;;  %vm232_vm1 = vcmask 130048   ;;  %p199_p7 = scmp.lt.s32.totalorder %s609_s16, 1 }
  0x33   : > { %268 = vmatprep.mubr.bf16.mxu0 %v569_v1  ;;  %236 = vmatprep.subr.bf16.mxu0 %v494_v2  ;;  %v211_v5 = vld [vmem:[%s705_s0] sm:$0xf]  ;;  %s203_s30 = smul.u32 3, %s609_s16  ;;  %v319_v7 = vshrl.u32 %v318_v6, 7 }
  0x34   : > { %441 = vmatpush3.bf16.msra.mxu1 %v496_v3  ;;  %237 = vmatpush1.bf16.msra.mxu0 %v497_v4  ;;  %s200_s21 = scalar_select %p199_p7, %s609_s16, 1 }
  0x35   : > { %p204_p8 = scmp.lt.s32.totalorder %s203_s30, 5  ;;  %v328_v8 = vsub.s32 2, %v319_v7  ;;  %v320_v10 = vsub.s32 0, %v319_v7  ;;  %v324_v11 = vsub.s32 1, %v319_v7 }
  0x36   : > { %s449_s28 = smul.u32 3, %s200_s21 }
  0x37   : > { %443 = vmatmul.mubr.msk.bf16.vlgmr.msra.gmra.mrb[0].mxu1 %vm232_vm1, %v211_v5  ;;  %434 = vmatmul.mubr.msk.bf16.vlgmr.msra.gmra.mrb[0].mxu0 %vm232_vm1, %v211_v5  ;;  %s717_s30 = smov (!%p204_p8, %s203_s30), 5 }
  0x38   : > { %s202_s6 = scalar_lea.vmem %s707_s2, %s449_s28  ;;  %s430_s7 = sshll.u32 %s717_s30, 3 }
  0x39   : > { %v210_v9 = vld [vmem:[%s202_s6] sm:$0x7]  ;;  %s207_s9 = scalar_lea.vmem %s708_s3, %s430_s7 }
  0x3a   : > { %v329_v12 = vrot.slane %v210_v9, %v328_v8  ;;  %v321_v13 = vrot.slane %v210_v9, %v320_v10  ;;  %v325_v14 = vrot.slane %v210_v9, %v324_v11 }
 0x10a   : > { %v311_v15 = vpop.f32.mrb[0].mxu1  ;;  %v270_v17 = vpop.f32.mrb[0].mxu0 }
 0x10b   : > { %v335_v16 = vadd.f32 %v329_v12, %v311_v15  ;;  %v444_v18 = vpop.f32.mrb[1].mxu1  ;;  %v333_v19 = vadd.f32 %v321_v13, %v270_v17  ;;  %v272_v20 = vpop.f32.mrb[1].mxu0 }
 0x10c   : > { %v314_v21 = vpop.f32.mrb[2].mxu1  ;;  %v334_v23 = vadd.f32 %v325_v14, %v272_v20  ;;  %v274_v24 = vpop.f32.mrb[2].mxu0 }
 0x10d   : > { %v338_v22 = vmax.f32 %v335_v16, 0.0  ;;  %v445_v25 = vpop.f32.mrb[3].mxu1  ;;  %v336_v26 = vmax.f32 %v333_v19, 0.0  ;;  %v275_v27 = vpop.f32.mrb[3].mxu0 }
 0x10e   : > { %v337_v29 = vmax.f32 %v334_v23, 0.0 }
 0x10f   : > { %v341_v28 = vmin.f32 %v338_v22, 1.0  ;;  %v339_v30 = vmin.f32 %v336_v26, 1.0 }
 0x110   : > { %v340_v31 = vmin.f32 %v337_v29, 1.0 }
 0x111   : > { %344 = vst [vmem:[%s207_s9 + $0x10] sm:$0xff] %v341_v28  ;;  %342 = vst [vmem:[%s207_s9] sm:$0xff] %v339_v30 }
 0x112   : > { %343 = vst [vmem:[%s207_s9 + $0x8] sm:$0xff] %v340_v31 }
 0x113 PF: > { %p13_p9 = scmp.ge.s32.totalorder %s612_s17, 4   ;;  %s712_s12 = smov %s554_s13 }
 0x114   : > { %s713_s13 = smov %s558_s14  ;;  %s714_s14 = smov %s622_s20 }
 0x115   : > { %s715_s15 = smov %s612_s17  ;;  %15 = sbr.rel (!%p13_p9) target bundleno = 3 (0x3), region = 75 }
 0x11c   :  { %367 = vsyncpa [#allocation3], 1 }
 0x11d   :  { %369 = vsyncpa [#allocation3 + $0x1], 1 }

</bundles_post_ra>
